<compile_context>
chip_gen: v7x
topology: tpu7x:2x2x1
jax: 0.10.0
libtpu: 0.0.40
codegen_flags: <defaults>
</compile_context>

<pallas_src>
import jax
import jax.numpy as jnp
from jax.experimental import pallas as pl
from jax.experimental.pallas import tpu as pltpu


def _make_divisible(v, divisor, min_value=None):
    if min_value is None:
        min_value = divisor
    new_v = max(min_value, int(v + divisor / 2) // divisor * divisor)
    if new_v < 0.9 * v:
        new_v += divisor
    return new_v


def _se_kernel(x_ref, w1_ref, b1_ref, w2t_ref, b2_ref, o_ref):
    # x_ref block: (Bt, C, HW) — channels on sublanes, spatial on lanes.
    inv_hw = 1.0 / x_ref.shape[2]

    # Global average pool over the lane (HW) axis, accumulated in f32.
    # (No full f32 copy of the block is kept alive — the cast is fused into
    #  the reduce; x is re-read in its native dtype for the final multiply.)
    pooled = jnp.sum(x_ref[...].astype(jnp.float32), axis=2,
                     keepdims=True) * inv_hw                      # (Bt, C, 1)

    # fc1 (1x1 conv == dense C->Csq) + ReLU, as broadcast-mul + sublane reduce.
    h = jnp.sum(pooled * w1_ref[...], axis=1, keepdims=True) + b1_ref[...]
    h = jnp.maximum(h, 0.0)                                       # (Bt, 1, Csq)

    # fc2 (dense Csq->C) + hardsigmoid: relu6(x+3)/6 == clip(x/6 + 0.5, 0, 1).
    s = jnp.sum(h * w2t_ref[...], axis=2, keepdims=True) + b2_ref[...]
    s = jnp.clip(s * (1.0 / 6.0) + 0.5, 0.0, 1.0)                 # (Bt, C, 1)

    # Scale the input: (Bt, C, 1) broadcasts along lanes; store is lane-dense.
    o_ref[...] = x_ref[...] * s.astype(o_ref.dtype)


def squeeze_excitation(x_nchw, w1, b1, w2, b2):
    """x_nchw: (B, C, H, W); w1: (C, Csq); b1: (Csq,); w2: (Csq, C); b2: (C,)."""
    B, C, H, W = x_nchw.shape
    Csq = w1.shape[1]
    HW = H * W

    # Native NCHW layout, spatial flattened onto the lane axis — no transposes;
    # this reshape is a metadata-only view of the contiguous NCHW buffer.
    x = x_nchw.reshape(B, C, HW)
    w2t = w2.T                       # (C, Csq) — tiny, weights only
    b1_2d = b1.reshape(1, Csq)
    b2_2d = b2.reshape(C, 1)

    # Batch tile: big enough to amortize the ~0.35us/grid-step overhead and to
    # feed more than one MXU/VPU row, small enough that the double-buffered
    # in+out x blocks (4 * bt * C * HW * itemsize) stay well under the scoped
    # VMEM default (32 MiB on v7x's 64 MiB VMEM).
    itemsize = jnp.dtype(x_nchw.dtype).itemsize
    per_batch = C * HW * itemsize
    max_bt = max(1, (4 * 1024 * 1024) // per_batch)
    bt = 1
    for cand in range(min(B, max_bt), 0, -1):
        if B % cand == 0:
            bt = cand
            break
    # TODO(synk): for B==1 on v7x both TensorCores are only used if the scale
    # pass is split across cores (e.g. an HW-tiled second pass); not done here.

    out = pl.pallas_call(
        _se_kernel,
        out_shape=jax.ShapeDtypeStruct((B, C, HW), x_nchw.dtype),
        grid_spec=pltpu.PrefetchScalarGridSpec(
            num_scalar_prefetch=0,
            grid=(B // bt,),
            in_specs=[
                pl.BlockSpec((bt, C, HW), lambda b: (b, 0, 0)),   # x tile
                pl.BlockSpec((C, Csq), lambda b: (0, 0)),         # w1 (full)
                pl.BlockSpec((1, Csq), lambda b: (0, 0)),         # b1
                pl.BlockSpec((C, Csq), lambda b: (0, 0)),         # w2^T (full)
                pl.BlockSpec((C, 1), lambda b: (0, 0)),           # b2
            ],
            out_specs=pl.BlockSpec((bt, C, HW), lambda b: (b, 0, 0)),
        ),
        compiler_params=pltpu.CompilerParams(
            dimension_semantics=("parallel",)),
    )(x, w1, b1_2d, w2t, b2_2d)

    return out.reshape(B, C, H, W)


def reference_se(x_nchw, w1, b1, w2, b2):
    """Pure-JAX reference matching the PyTorch forward."""
    pooled = jnp.mean(x_nchw, axis=(2, 3))                    # (B, C)
    h = jnp.maximum(pooled @ w1 + b1, 0.0)                    # (B, Csq)
    s = h @ w2 + b2                                           # (B, C)
    s = jnp.clip(s / 6.0 + 0.5, 0.0, 1.0)                     # hardsigmoid
    return x_nchw * s[:, :, None, None]


if __name__ == "__main__":
    B, C, H, W = 2, 4, 16, 16
    Csq = _make_divisible(C // 4, 8)   # = 8

    key = jax.random.PRNGKey(0)
    kx, k1, k2, k3, k4 = jax.random.split(key, 5)

    x = jax.random.normal(kx, (B, C, H, W), dtype=jnp.float32)
    # deterministic synthetic weights (Conv2d 1x1 == dense); scaled small.
    w1 = 0.1 * jax.random.normal(k1, (C, Csq), dtype=jnp.float32)
    b1 = 0.1 * jax.random.normal(k2, (Csq,), dtype=jnp.float32)
    w2 = 0.1 * jax.random.normal(k3, (Csq, C), dtype=jnp.float32)
    b2 = 0.1 * jax.random.normal(k4, (C,), dtype=jnp.float32)

    out = squeeze_excitation(x, w1, b1, w2, b2)
    jax.block_until_ready(out)

    ref = reference_se(x, w1, b1, w2, b2)
    assert out.shape == (B, C, H, W)
    assert jnp.allclose(out, ref, atol=1e-5, rtol=1e-5), "mismatch vs reference"

    print("KERNEL_OK")
</pallas_src>

<mosaic_0001>
module attributes {stable_mosaic.version = 11 : i64} {
  func.func @_se_kernel(%arg0: i32, %arg1: memref<2x4x256xf32, #tpu.memory_space<vmem>>, %arg2: memref<4x8xf32, #tpu.memory_space<vmem>>, %arg3: memref<1x8xf32, #tpu.memory_space<vmem>>, %arg4: memref<4x8xf32, #tpu.memory_space<vmem>>, %arg5: memref<4x1xf32, #tpu.memory_space<vmem>>, %arg6: memref<2x4x256xf32, #tpu.memory_space<vmem>>) attributes {dimension_semantics = [#tpu.dimension_semantics<parallel>], iteration_bounds = array<i64: 1>, scalar_prefetch = 0 : i64, scratch_operands = 0 : i64, tpu.core_type = #tpu.core_type<tc>, window_params = [{transform_indices = @transform_0, window_bounds = array<i64: 2, 4, 256>}, {pipeline_mode = #tpu.pipeline_mode<synchronous>, transform_indices = @transform_1, window_bounds = array<i64: 4, 8>}, {pipeline_mode = #tpu.pipeline_mode<synchronous>, transform_indices = @transform_2, window_bounds = array<i64: 1, 8>}, {pipeline_mode = #tpu.pipeline_mode<synchronous>, transform_indices = @transform_3, window_bounds = array<i64: 4, 8>}, {pipeline_mode = #tpu.pipeline_mode<synchronous>, transform_indices = @transform_4, window_bounds = array<i64: 4, 1>}, {transform_indices = @transform_5, window_bounds = array<i64: 2, 4, 256>}]} {
    %c0 = arith.constant 0 : index
    %c0_0 = arith.constant 0 : index
    %c0_1 = arith.constant 0 : index
    %0 = vector.load %arg1[%c0, %c0_0, %c0_1] : memref<2x4x256xf32, #tpu.memory_space<vmem>>, vector<2x4x256xf32>
    %cst = arith.constant dense<0.000000e+00> : vector<2x4xf32>
    %1 = vector.multi_reduction <add>, %0, %cst [2] : vector<2x4x256xf32> to vector<2x4xf32>
    %2 = vector.shape_cast %1 : vector<2x4xf32> to vector<2x4x1xf32>
    %cst_2 = arith.constant 3.906250e-03 : f32
    %3 = vector.broadcast %cst_2 : f32 to vector<2x4x1xf32>
    %4 = arith.mulf %2, %3 : vector<2x4x1xf32>
    %c0_3 = arith.constant 0 : index
    %c0_4 = arith.constant 0 : index
    %5 = vector.load %arg2[%c0_3, %c0_4] : memref<4x8xf32, #tpu.memory_space<vmem>>, vector<4x8xf32>
    %6 = vector.shape_cast %5 : vector<4x8xf32> to vector<1x4x8xf32>
    %7 = vector.broadcast %4 : vector<2x4x1xf32> to vector<2x4x8xf32>
    %8 = vector.broadcast %6 : vector<1x4x8xf32> to vector<2x4x8xf32>
    %9 = arith.mulf %7, %8 : vector<2x4x8xf32>
    %cst_5 = arith.constant dense<0.000000e+00> : vector<2x8xf32>
    %10 = vector.multi_reduction <add>, %9, %cst_5 [1] : vector<2x4x8xf32> to vector<2x8xf32>
    %11 = vector.shape_cast %10 : vector<2x8xf32> to vector<2x1x8xf32>
    %c0_6 = arith.constant 0 : index
    %c0_7 = arith.constant 0 : index
    %12 = vector.load %arg3[%c0_6, %c0_7] : memref<1x8xf32, #tpu.memory_space<vmem>>, vector<1x8xf32>
    %13 = vector.shape_cast %12 : vector<1x8xf32> to vector<1x1x8xf32>
    %14 = vector.broadcast %13 : vector<1x1x8xf32> to vector<2x1x8xf32>
    %15 = arith.addf %11, %14 : vector<2x1x8xf32>
    %cst_8 = arith.constant 0.000000e+00 : f32
    %16 = vector.broadcast %cst_8 : f32 to vector<2x1x8xf32>
    %17 = arith.maximumf %15, %16 : vector<2x1x8xf32>
    %c0_9 = arith.constant 0 : index
    %c0_10 = arith.constant 0 : index
    %18 = vector.load %arg4[%c0_9, %c0_10] : memref<4x8xf32, #tpu.memory_space<vmem>>, vector<4x8xf32>
    %19 = vector.shape_cast %18 : vector<4x8xf32> to vector<1x4x8xf32>
    %20 = vector.broadcast %17 : vector<2x1x8xf32> to vector<2x4x8xf32>
    %21 = vector.broadcast %19 : vector<1x4x8xf32> to vector<2x4x8xf32>
    %22 = arith.mulf %20, %21 : vector<2x4x8xf32>
    %cst_11 = arith.constant dense<0.000000e+00> : vector<2x4xf32>
    %23 = vector.multi_reduction <add>, %22, %cst_11 [2] : vector<2x4x8xf32> to vector<2x4xf32>
    %24 = vector.shape_cast %23 : vector<2x4xf32> to vector<2x4x1xf32>
    %c0_12 = arith.constant 0 : index
    %c0_13 = arith.constant 0 : index
    %25 = vector.load %arg5[%c0_12, %c0_13] : memref<4x1xf32, #tpu.memory_space<vmem>>, vector<4x1xf32>
    %26 = vector.shape_cast %25 : vector<4x1xf32> to vector<1x4x1xf32>
    %27 = vector.broadcast %26 : vector<1x4x1xf32> to vector<2x4x1xf32>
    %28 = arith.addf %24, %27 : vector<2x4x1xf32>
    %cst_14 = arith.constant 0.166666672 : f32
    %29 = vector.broadcast %cst_14 : f32 to vector<2x4x1xf32>
    %30 = arith.mulf %28, %29 : vector<2x4x1xf32>
    %cst_15 = arith.constant 5.000000e-01 : f32
    %31 = vector.broadcast %cst_15 : f32 to vector<2x4x1xf32>
    %32 = arith.addf %30, %31 : vector<2x4x1xf32>
    %cst_16 = arith.constant 0.000000e+00 : f32
    %cst_17 = arith.constant 1.000000e+00 : f32
    %33 = vector.broadcast %cst_16 : f32 to vector<2x4x1xf32>
    %34 = arith.maximumf %33, %32 : vector<2x4x1xf32>
    %35 = vector.broadcast %cst_17 : f32 to vector<2x4x1xf32>
    %36 = arith.minimumf %35, %34 : vector<2x4x1xf32>
    %c0_18 = arith.constant 0 : index
    %c0_19 = arith.constant 0 : index
    %c0_20 = arith.constant 0 : index
    %37 = vector.load %arg1[%c0_18, %c0_19, %c0_20] : memref<2x4x256xf32, #tpu.memory_space<vmem>>, vector<2x4x256xf32>
    %38 = vector.broadcast %36 : vector<2x4x1xf32> to vector<2x4x256xf32>
    %39 = arith.mulf %37, %38 : vector<2x4x256xf32>
    %c0_21 = arith.constant 0 : index
    %c0_22 = arith.constant 0 : index
    %c0_23 = arith.constant 0 : index
    %40 = vector.load %arg6[%c0_21, %c0_22, %c0_23] : memref<2x4x256xf32, #tpu.memory_space<vmem>>, vector<2x4x256xf32>
    tpu.vector_store %arg6[%c0_21, %c0_22, %c0_23], %39 {strides = array<i32>} : memref<2x4x256xf32, #tpu.memory_space<vmem>>, vector<2x4x256xf32>,
    return
  }
  func.func @transform_0(%arg0: i32) -> (i32, i32, i32) {
    %c0_i32 = arith.constant 0 : i32
    %c0_i32_0 = arith.constant 0 : i32
    %c0_i32_1 = arith.constant 0 : i32
    return %arg0, %c0_i32, %c0_i32_0 : i32, i32, i32
  }
  func.func @transform_1(%arg0: i32) -> (i32, i32) {
    %c0_i32 = arith.constant 0 : i32
    %c0_i32_0 = arith.constant 0 : i32
    %c0_i32_1 = arith.constant 0 : i32
    return %c0_i32, %c0_i32_0 : i32, i32
  }
  func.func @transform_2(%arg0: i32) -> (i32, i32) {
    %c0_i32 = arith.constant 0 : i32
    %c0_i32_0 = arith.constant 0 : i32
    %c0_i32_1 = arith.constant 0 : i32
    return %c0_i32, %c0_i32_0 : i32, i32
  }
  func.func @transform_3(%arg0: i32) -> (i32, i32) {
    %c0_i32 = arith.constant 0 : i32
    %c0_i32_0 = arith.constant 0 : i32
    %c0_i32_1 = arith.constant 0 : i32
    return %c0_i32, %c0_i32_0 : i32, i32
  }
  func.func @transform_4(%arg0: i32) -> (i32, i32) {
    %c0_i32 = arith.constant 0 : i32
    %c0_i32_0 = arith.constant 0 : i32
    %c0_i32_1 = arith.constant 0 : i32
    return %c0_i32, %c0_i32_0 : i32, i32
  }
  func.func @transform_5(%arg0: i32) -> (i32, i32, i32) {
    %c0_i32 = arith.constant 0 : i32
    %c0_i32_0 = arith.constant 0 : i32
    %c0_i32_1 = arith.constant 0 : i32
    return %arg0, %c0_i32, %c0_i32_0 : i32, i32, i32
  }
}

</mosaic_0001>

<bundles_post_ra>
// kernel: tpu_custom_call.1
= control target key start
LH: loop header
LB: loop body
LE: loop exit
PB: predicated region body
PF: predicated region fallthrough
CT: control target
= control target key end

     0   :  { %10 = vsyncpa [#allocation3], 0  ;;  %s304_s0 = inlined_call_operand.hbm [shape: f32[2,4,256], index: 0, kind: input, shape index: {}]   ;;  %s305_s1 = inlined_call_operand.vmem [shape: f32[4,8], index: 1, kind: input, shape index: {}]   ;;  %s306_s2 = inlined_call_operand.vmem [shape: f32[1,8], index: 2, kind: input, shape index: {}]   ;;  %s307_s3 = inlined_call_operand.vmem [shape: f32[4,8], index: 3, kind: input, shape index: {}]   ;;  %s308_s4 = inlined_call_operand.vmem [shape: f32[4,1], index: 4, kind: input, shape index: {}]   ;;  %s309_s5 = inlined_call_operand.hbm [shape: f32[2,4,256], index: 5, kind: output, shape index: {}]  }
   0x1   :  { %11 = vsyncpa [#allocation4], 0  ;;  %s210_s18 = smov [#allocation2]   ;;  %s162_s22 = scalar_lea.hbm %s304_s0, 256 }
   0x2   :  { %s17_s19 = sshll.u32 %s210_s18, 4  ;;  %p163_p0 = scmp.ne.s32.totalorder %s304_s0, %s162_s22  ;;  %s18_s19 = int_to_ptr.vmem [resolvable:$true] %s17_s19 }
   0x3   :  { %p166_p1 = scmp.lt.u32.totalorder %s162_s22, %s304_s0 }
   0x5   :  { %p168_p2 = pnand %p166_p1, %p163_p0 }
   0x7   :  { %171 = shalt.err (!%p168_p2)
}
   0x8   :  { %s172_s27 = scalar_lea.vmem %s18_s19, 256  ;;  %p177_p4 = scmp.lt.s32.totalorder %s18_s19, %s18_s19 }
   0x9   :  { %p173_p3 = scmp.ne.s32.totalorder %s18_s19, %s172_s27  ;;  %p178_p5 = scmp.lt.s32.totalorder %s172_s27, %s172_s27 }
   0xb   :  { %p179_p6 = por %p178_p5, %p177_p4 }
   0xd   :  { %p180_p7 = pnand %p179_p6, %p173_p3 }
   0xf   :  { %183 = shalt.err (!%p180_p7)
}
  0x10   :  { %s211_s28 = smov 128   ;;  %s212_s29 = smov 8  }
  0x11   :  { %23 = dma.hbm_to_vmem [thread:$0]  %s304_s0, 256, %s18_s19, [#allocation3], %s211_s28, %s211_s28, %s212_s29  }
  0x12   :  { %206 = dma.done.wait [#allocation3], 256  }
  0x13   :  { %207 = vsyncadd [#allocation3], 4294967040  ;;  %vm43_vm0 = vcmask 1043456   ;;  %v261_v0 = vld [vmem:[#allocation2] sm:$0xff]  ;;  %v263_v1 = vld [vmem:[#allocation2 + $0x8] sm:$0xff]  ;;  %vm59_vm1 = vcmask 60416   ;;  %v80_v22 = vlaneseq }
  0x14   :  { %v39_v2 = vcombine.high %v261_v0, %v261_v0  ;;  %v44_v3 = vsel %vm43_vm0, %v261_v0, 0.0  ;;  %v40_v4 = vcombine.high %v263_v1, %v263_v1  ;;  %v49_v6 = vsel %vm43_vm0, %v263_v1, 0.0  ;;  %v56_v10 = vld [vmem:[%s305_s1] sm:$0xf] }
  0x15   :  { %v81_v27 = vshrl.u32 %v80_v22, 7  ;;  %v74_v29 = vld [vmem:[%s306_s2] sm:$0x1]  ;;  %v213_v46 = vmov 0   ;;  %v214_v60 = vmov 839922192  }
  0x16   :  { %v45_v5 = vsel %vm43_vm0, %v39_v2, 0.0  ;;  %v50_v7 = vsel %vm43_vm0, %v40_v4, 0.0  ;;  %v79_v37 = vld [vmem:[%s307_s3] sm:$0xf]  ;;  %158 = vset.pattern.permute.xlu0 %v213_v46  ;;  %159 = vset.pattern.permute.xlu1 %v213_v46  ;;  %v116_v61 = vunpack.c.l.s4 %v214_v60  ;;  %s215_s3 = smov [#allocation5]  }
  0x17   :  { %v46_v8 = vadd.f32 %v45_v5, %v44_v3  ;;  %v51_v9 = vadd.f32 %v50_v7, %v49_v6  ;;  %v82_v33 = vsub.s32 0, %v81_v27  ;;  %v96_v47 = vld [vmem:[%s308_s4] sm:$0xf]  ;;  %s140_s4 = sshll.u32 %s215_s3, 4  ;;  %s141_s4 = int_to_ptr.vmem [resolvable:$true] %s140_s4 }
  0x18   :  { %v117_v62 = vunpack.c.0.s8 %v116_v61  ;;  %s184_s12 = scalar_lea.vmem %s141_s4, 256  ;;  %p189_p9 = scmp.lt.s32.totalorder %s141_s4, %s141_s4 }
  0x19   :  { %47 = vadd.xlane.f32.xlu0 %v46_v8  ;;  %p185_p8 = scmp.ne.s32.totalorder %s141_s4, %s184_s12  ;;  %p190_p10 = scmp.lt.s32.totalorder %s184_s12, %s184_s12 }
  0x1a   :  { %v120_v63 = vsub.s32 %v117_v62, %v81_v27 }
  0x1b   :  { %p191_p11 = por %p190_p10, %p189_p9 }
  0x1d   :  { %52 = vadd.xlane.f32.xlu0 %v51_v9  ;;  %p192_p12 = pnand %p191_p11, %p185_p8 }
  0xa6   :  { %v48_v11 = vpop.xlane.xlu0 %47 }
  0xa7   :  { %v54_v12 = vmul.f32 0.00390625, %v48_v11 }
  0xa9   :  { %v57_v13 = vmul.f32 %v56_v10, %v54_v12 }
  0xaa   :  { %v53_v14 = vpop.xlane.xlu0 %52 }
  0xab   :  { %v55_v15 = vmul.f32 0.00390625, %v53_v14  ;;  %v60_v16 = vsel %vm59_vm1, %v57_v13, 0.0 }
  0xac   :  { %v61_v17 = vrot.slane %v60_v16, 4 }
  0xad   :  { %v58_v18 = vmul.f32 %v56_v10, %v55_v15 }
  0xae   :  { %v62_v19 = vadd.f32 %v61_v17, %v60_v16 }
  0xaf   :  { %v67_v20 = vsel %vm59_vm1, %v58_v18, 0.0 }
  0xb0   :  { %v63_v21 = vrot.slane %v62_v19, 2  ;;  %v68_v23 = vrot.slane %v67_v20, 4 }
  0xb2   :  { %v64_v24 = vadd.f32 %v63_v21, %v62_v19  ;;  %v69_v25 = vadd.f32 %v68_v23, %v67_v20 }
  0xb4   :  { %v65_v26 = vrot.slane %v64_v24, 1  ;;  %v70_v28 = vrot.slane %v69_v25, 2 }
  0xb6   :  { %v66_v30 = vadd.f32 %v65_v26, %v64_v24  ;;  %v71_v31 = vadd.f32 %v70_v28, %v69_v25 }
  0xb8   :  { %v75_v32 = vadd.f32 %v74_v29, %v66_v30  ;;  %v72_v34 = vrot.slane %v71_v31, 1 }
  0xba   :  { %v77_v35 = vmax.f32 %v75_v32, 0.0  ;;  %v73_v36 = vadd.f32 %v72_v34, %v71_v31 }
  0xbc   :  { %v83_v38 = vrot.slane %v77_v35, %v82_v33  ;;  %v76_v39 = vadd.f32 %v74_v29, %v73_v36 }
  0xbe   :  { %v88_v40 = vmul.f32 %v83_v38, %v79_v37  ;;  %v78_v41 = vmax.f32 %v76_v39, 0.0 }
  0xc0   :  { %v90_v42 = vsel %vm59_vm1, %v88_v40, 0.0  ;;  %v87_v43 = vrot.slane %v78_v41, %v82_v33 }
  0xc1   :  { %91 = vadd.xlane.f32.xlu1 %v90_v42 }
  0xc2   :  { %v89_v44 = vmul.f32 %v87_v43, %v79_v37 }
  0xc4   :  { %v93_v45 = vsel %vm59_vm1, %v89_v44, 0.0 }
  0xc5   :  { %94 = vadd.xlane.f32.xlu1 %v93_v45 }
 0x14e   :  { %v92_v48 = vpop.xlane.xlu1 %91 }
 0x14f   :  { %v97_v49 = vadd.f32 %v96_v47, %v92_v48 }
 0x151   :  { %v99_v50 = vmul.f32 0.16666667, %v97_v49 }
 0x152   :  { %v95_v51 = vpop.xlane.xlu1 %94 }
 0x153   :  { %v101_v52 = vadd.f32 0.5, %v99_v50  ;;  %v98_v53 = vadd.f32 %v96_v47, %v95_v51 }
 0x155   :  { %v103_v54 = vmax.f32 %v101_v52, 0.0  ;;  %v100_v55 = vmul.f32 0.16666667, %v98_v53 }
 0x157   :  { %v105_v56 = vmin.f32 %v103_v54, 1.0  ;;  %v102_v57 = vadd.f32 0.5, %v100_v55 }
 0x159   :  { %v104_v58 = vmax.f32 %v102_v57, 0.0  ;;  %109 = vperm.xlu0 %158, %v105_v56  }
 0x15b   :  { %v106_v59 = vmin.f32 %v104_v58, 1.0 }
 0x15d   :  { %113 = vperm.xlu1 %159, %v106_v59  }
 0x1d8   :  { %v110_v2 = vpop.permute.xlu0 %109 }
 0x1d9   :  { %v121_v3 = vrot.slane %v110_v2, %v120_v63 }
 0x1db   :  { %v131_v4 = vmul.f32 %v121_v3, %v261_v0 }
 0x1dc   :  { %v114_v5 = vpop.permute.xlu1 %113 }
 0x1dd   :  { %133 = vst [vmem:[#allocation5] sm:$0xff] %v131_v4  ;;  %v128_v6 = vrot.slane %v114_v5, %v120_v63 }
 0x1df   :  { %v132_v7 = vmul.f32 %v128_v6, %v263_v1 }
 0x1e1   :  { %134 = vst [vmem:[#allocation5 + $0x8] sm:$0xff] %v132_v7 }
 0x1e2   :  { %195 = shalt.err (!%p192_p12)
}
 0x1e3   :  { %s196_s15 = scalar_lea.hbm %s309_s5, 256 }
 0x1e4   :  { %p197_p13 = scmp.ne.s32.totalorder %s309_s5, %s196_s15  ;;  %p200_p0 = scmp.lt.u32.totalorder %s196_s15, %s309_s5 }
 0x1e6   :  { %p202_p1 = pnand %p200_p0, %p197_p13 }
 0x1e8   :  { %205 = shalt.err (!%p202_p1)
}
 0x1e9   :  { %146 = dma.vmem_to_hbm [thread:$0]  %s141_s4, 256, %s309_s5, [#allocation4], %s211_s28, %s211_s28, %s212_s29  }
 0x1ea   :  { %208 = dma.done.wait [#allocation4], 256  }
 0x1eb   :  { %209 = vsyncadd [#allocation4], 4294967040 }
 0x1ec   :  { %150 = vsyncpa [#allocation3], 1 }
 0x1ed   :  { %151 = vsyncpa [#allocation4], 1 }

</bundles_post_ra>
